<compile_context>
chip_gen: v5e
topology: v5e:2x2
jax: 0.10.0
libtpu: 0.0.40
codegen_flags: <defaults>
</compile_context>

<pallas_src>
import functools

import jax
import jax.numpy as jnp
import numpy as np
from jax.experimental import pallas as pl
from jax.experimental.pallas import tpu as pltpu

_LANES = 128
_SUBLANES = 8
_MAX_BLOCK_ROWS = 1024        # 1024 x 128 f32 = 512 KiB per block per array
_NUM_SPLITS_LARGE = 2         # v7x has 2 TensorCores; harmless elsewhere


def _cdiv(a, b):
    return -(-a // b)


def _round_up(x, m):
    return _cdiv(x, m) * m


def _bce_kernel(pred_ref, gt_ref, mask_ref, *out_refs, emit_loss):
    if emit_loss:
        negloss_ref, loss_ref, ploss_ref, pcnt_ref, ncnt_ref = out_refs
    else:
        negloss_ref, ploss_ref, pcnt_ref, ncnt_ref = out_refs

    # Zero this split's resident accumulators on its first block.
    @pl.when(pl.program_id(1) == 0)
    def _init():
        ploss_ref[...] = jnp.zeros_like(ploss_ref)
        pcnt_ref[...] = jnp.zeros_like(pcnt_ref)
        ncnt_ref[...] = jnp.zeros_like(ncnt_ref)

    pred = pred_ref[...]
    gt = gt_ref[...]
    mask = mask_ref[...]

    # gt/mask are binary {0,1} maps in DB, so (gt*mask).byte() == gt*mask.
    pos = gt * mask
    neg = (1.0 - gt) * mask

    # F.binary_cross_entropy(reduction='none'); log clamped at -100 (EUP logs).
    log_p = jnp.maximum(jnp.log(pred), -100.0)
    log_1mp = jnp.maximum(jnp.log(1.0 - pred), -100.0)
    loss = -(gt * log_p + (1.0 - gt) * log_1mp)

    negloss_ref[...] = loss * neg
    if emit_loss:
        loss_ref[...] = loss

    # Vreg-shaped partial sums: regroup (R,128) -> (R/8, 8, 128) and reduce the
    # leading axis (pure VPU adds, no cross-lane shuffles).  Final reduction of
    # the tiny (num_splits*8, 128) accumulators happens in the wrapper.
    rows = pred.shape[0]
    def _acc(x):
        return jnp.sum(x.reshape(rows // _SUBLANES, _SUBLANES, _LANES), axis=0)

    ploss_ref[...] += _acc(loss * pos)
    pcnt_ref[...] += _acc(pos)
    ncnt_ref[...] += _acc(neg)


def _run_bce_kernel(pred2d, gt2d, mask2d, *, num_splits, block_rows, emit_loss):
    rows = pred2d.shape[0]
    blocks_per_split = rows // (num_splits * block_rows)
    grid = (num_splits, blocks_per_split)

    def tile_map(c, i):
        return (c * blocks_per_split + i, 0)

    tile_spec = pl.BlockSpec((block_rows, _LANES), tile_map)
    acc_spec = pl.BlockSpec((_SUBLANES, _LANES), lambda c, i: (c, 0))

    out_specs = [tile_spec]
    out_shape = [jax.ShapeDtypeStruct((rows, _LANES), jnp.float32)]   # neg loss
    if emit_loss:
        out_specs.append(tile_spec)
        out_shape.append(jax.ShapeDtypeStruct((rows, _LANES), jnp.float32))
    out_specs += [acc_spec] * 3
    out_shape += [jax.ShapeDtypeStruct((num_splits * _SUBLANES, _LANES),
                                       jnp.float32)] * 3

    n_elem = rows * _LANES
    n_full_arrays = 4 + (1 if emit_loss else 0)   # 3 reads + 1/2 writes
    cost = pl.CostEstimate(
        flops=10 * n_elem,
        transcendentals=2 * n_elem,
        bytes_accessed=4 * n_full_arrays * n_elem,
    )

    return pl.pallas_call(
        functools.partial(_bce_kernel, emit_loss=emit_loss),
        grid_spec=pltpu.PrefetchScalarGridSpec(
            num_scalar_prefetch=0,
            grid=grid,
            in_specs=[tile_spec, tile_spec, tile_spec],
            out_specs=out_specs,
        ),
        out_shape=out_shape,
        compiler_params=pltpu.CompilerParams(
            dimension_semantics=("parallel", "arbitrary"),
            vmem_limit_bytes=32 * 1024 * 1024,
        ),
        cost_estimate=cost,
    )(pred2d, gt2d, mask2d)


@functools.partial(jax.jit, static_argnames=("negative_ratio", "eps", "return_origin"))
def balance_cross_entropy_loss(pred, gt, mask, negative_ratio=3.0, eps=1e-6,
                               return_origin=False):
    orig_shape = pred.shape
    total = int(np.prod(orig_shape))

    # Static (trace-time) tiling decisions.
    rows_min = _round_up(_cdiv(total, _LANES), _SUBLANES)
    block_rows = min(_MAX_BLOCK_ROWS, rows_min)
    num_splits = _NUM_SPLITS_LARGE if rows_min >= _NUM_SPLITS_LARGE * block_rows else 1
    blocks_per_split = _cdiv(rows_min, num_splits * block_rows)
    rows = num_splits * blocks_per_split * block_rows
    padded = rows * _LANES
    pad = padded - total

    pred_f = jnp.pad(pred.reshape(-1).astype(jnp.float32), (0, pad),
                     constant_values=0.5)   # safe log argument for padding
    gt_f = jnp.pad(gt.reshape(-1).astype(jnp.float32), (0, pad))
    mask_f = jnp.pad(mask.reshape(-1).astype(jnp.float32), (0, pad))

    outs = _run_bce_kernel(
        pred_f.reshape(rows, _LANES),
        gt_f.reshape(rows, _LANES),
        mask_f.reshape(rows, _LANES),
        num_splits=num_splits, block_rows=block_rows, emit_loss=return_origin)

    if return_origin:
        negloss2d, loss2d, ploss_p, pcnt_p, ncnt_p = outs
    else:
        negloss2d, ploss_p, pcnt_p, ncnt_p = outs
        loss2d = None

    positive_loss_sum = jnp.sum(ploss_p)
    positive_count_f = jnp.sum(pcnt_p)
    negative_total_f = jnp.sum(ncnt_p)

    # int(...) truncation semantics of the PyTorch module.
    positive_count = positive_count_f.astype(jnp.int32)
    negative_count = jnp.minimum(
        negative_total_f.astype(jnp.int32),
        (positive_count_f * negative_ratio).astype(jnp.int32),
    )

    # torch.topk(negative_loss.view(-1), negative_count).sum() with a dynamic k:
    # sort descending, cumulative sum, pick entry `negative_count` (exact).
    # TODO(synk): for very large maps replace this O(N log N) XLA sort with an
    # O(N) threshold-search (few masked count/sum Pallas passes) to avoid the
    # sort dominating end-to-end wall clock.
    neg_flat = negloss2d.reshape(-1)
    neg_sorted = jnp.sort(neg_flat)[::-1]
    csum = jnp.concatenate(
        [jnp.zeros((1,), jnp.float32), jnp.cumsum(neg_sorted)])
    negative_topk_sum = csum[negative_count]

    denom = (positive_count.astype(jnp.float32)
             + negative_count.astype(jnp.float32) + eps)
    balance_loss = (positive_loss_sum + negative_topk_sum) / denom

    if return_origin:
        loss_full = loss2d.reshape(-1)[:total].reshape(orig_shape)
        return balance_loss, loss_full
    return balance_loss


def _numpy_reference(pred, gt, mask, negative_ratio=3.0, eps=1e-6):
    pred = np.asarray(pred, np.float32)
    gt = np.asarray(gt, np.float32)
    mask = np.asarray(mask, np.float32)
    positive = (gt * mask).astype(np.uint8).astype(np.float32)
    negative = ((1 - gt) * mask).astype(np.uint8).astype(np.float32)
    positive_count = int(positive.sum())
    negative_count = min(int(negative.sum()), int(positive_count * negative_ratio))
    loss = -(gt * np.maximum(np.log(pred), -100.0)
             + (1 - gt) * np.maximum(np.log(1 - pred), -100.0))
    positive_loss = loss * positive
    negative_loss = (loss * negative).reshape(-1)
    topk = np.sort(negative_loss)[::-1][:negative_count]
    bal = (positive_loss.sum() + topk.sum()) / (positive_count + negative_count + eps)
    return bal, loss


if __name__ == "__main__":
    key = jax.random.PRNGKey(0)
    k1, k2, k3 = jax.random.split(key, 3)
    shape = (2, 4, 16, 16)  # NCHW
    pred = jax.nn.sigmoid(jax.random.normal(k1, shape, jnp.float32))
    gt = jax.random.bernoulli(k2, 0.3, shape).astype(jnp.float32)
    mask = jax.random.bernoulli(k3, 0.8, shape).astype(jnp.float32)

    ref_bal, ref_loss = _numpy_reference(np.asarray(pred), np.asarray(gt),
                                         np.asarray(mask))

    # Common path: return_origin=False (no full-size loss map written to HBM).
    out = balance_cross_entropy_loss(pred, gt, mask)
    out = jax.block_until_ready(out)
    np.testing.assert_allclose(np.asarray(out), ref_bal, rtol=1e-3, atol=1e-5)

    # return_origin=True variant (emits the elementwise loss map too).
    out2, loss_map = balance_cross_entropy_loss(pred, gt, mask,
                                                return_origin=True)
    out2 = jax.block_until_ready(out2)
    loss_map = jax.block_until_ready(loss_map)
    np.testing.assert_allclose(np.asarray(out2), ref_bal, rtol=1e-3, atol=1e-5)
    np.testing.assert_allclose(np.asarray(loss_map), ref_loss,
                               rtol=2e-3, atol=1e-5)

    print("KERNEL_OK")
</pallas_src>

<mosaic_0001>
module attributes {stable_mosaic.version = 11 : i64} {
  func.func @_bce_kernel(%arg0: i32, %arg1: i32, %arg2: memref<16x128xf32, #tpu.memory_space<vmem>>, %arg3: memref<16x128xf32, #tpu.memory_space<vmem>>, %arg4: memref<16x128xf32, #tpu.memory_space<vmem>>, %arg5: memref<16x128xf32, #tpu.memory_space<vmem>>, %arg6: memref<8x128xf32, #tpu.memory_space<vmem>>, %arg7: memref<8x128xf32, #tpu.memory_space<vmem>>, %arg8: memref<8x128xf32, #tpu.memory_space<vmem>>) attributes {dimension_semantics = [#tpu.dimension_semantics<parallel>, #tpu.dimension_semantics<arbitrary>], iteration_bounds = array<i64: 1, 1>, scalar_prefetch = 0 : i64, scratch_operands = 0 : i64, tpu.core_type = #tpu.core_type<tc>, window_params = [{transform_indices = @transform_0, window_bounds = array<i64: 16, 128>}, {transform_indices = @transform_1, window_bounds = array<i64: 16, 128>}, {transform_indices = @transform_2, window_bounds = array<i64: 16, 128>}, {transform_indices = @transform_3, window_bounds = array<i64: 16, 128>}, {transform_indices = @transform_4, window_bounds = array<i64: 8, 128>}, {transform_indices = @transform_5, window_bounds = array<i64: 8, 128>}, {transform_indices = @transform_6, window_bounds = array<i64: 8, 128>}]} {
    %c0_i32 = arith.constant 0 : i32
    %0 = arith.cmpi eq, %arg1, %c0_i32 : i32
    %1 = arith.extui %0 : i1 to i32
    %c0_i32_0 = arith.constant 0 : i32
    %2 = arith.cmpi ne, %1, %c0_i32_0 : i32
    scf.if %2 {
      %cst_28 = arith.constant 0.000000e+00 : f32
      %43 = vector.broadcast %cst_28 : f32 to vector<8x128xf32>
      %c0_29 = arith.constant 0 : index
      %c0_30 = arith.constant 0 : index
      %44 = vector.load %arg6[%c0_29, %c0_30] : memref<8x128xf32, #tpu.memory_space<vmem>>, vector<8x128xf32>
      tpu.vector_store %arg6[%c0_29, %c0_30], %43 {strides = array<i32>} : memref<8x128xf32, #tpu.memory_space<vmem>>, vector<8x128xf32>,
      %cst_31 = arith.constant 0.000000e+00 : f32
      %45 = vector.broadcast %cst_31 : f32 to vector<8x128xf32>
      %c0_32 = arith.constant 0 : index
      %c0_33 = arith.constant 0 : index
      %46 = vector.load %arg7[%c0_32, %c0_33] : memref<8x128xf32, #tpu.memory_space<vmem>>, vector<8x128xf32>
      tpu.vector_store %arg7[%c0_32, %c0_33], %45 {strides = array<i32>} : memref<8x128xf32, #tpu.memory_space<vmem>>, vector<8x128xf32>,
      %cst_34 = arith.constant 0.000000e+00 : f32
      %47 = vector.broadcast %cst_34 : f32 to vector<8x128xf32>
      %c0_35 = arith.constant 0 : index
      %c0_36 = arith.constant 0 : index
      %48 = vector.load %arg8[%c0_35, %c0_36] : memref<8x128xf32, #tpu.memory_space<vmem>>, vector<8x128xf32>
      tpu.vector_store %arg8[%c0_35, %c0_36], %47 {strides = array<i32>} : memref<8x128xf32, #tpu.memory_space<vmem>>, vector<8x128xf32>,
    } else {
    }
    %c0 = arith.constant 0 : index
    %c0_1 = arith.constant 0 : index
    %3 = vector.load %arg2[%c0, %c0_1] : memref<16x128xf32, #tpu.memory_space<vmem>>, vector<16x128xf32>
    %c0_2 = arith.constant 0 : index
    %c0_3 = arith.constant 0 : index
    %4 = vector.load %arg3[%c0_2, %c0_3] : memref<16x128xf32, #tpu.memory_space<vmem>>, vector<16x128xf32>
    %c0_4 = arith.constant 0 : index
    %c0_5 = arith.constant 0 : index
    %5 = vector.load %arg4[%c0_4, %c0_5] : memref<16x128xf32, #tpu.memory_space<vmem>>, vector<16x128xf32>
    %6 = arith.mulf %4, %5 : vector<16x128xf32>
    %cst = arith.constant 1.000000e+00 : f32
    %7 = vector.broadcast %cst : f32 to vector<16x128xf32>
    %8 = arith.subf %7, %4 : vector<16x128xf32>
    %9 = arith.mulf %8, %5 : vector<16x128xf32>
    %10 = math.log %3 : vector<16x128xf32>
    %cst_6 = arith.constant -1.000000e+02 : f32
    %11 = vector.broadcast %cst_6 : f32 to vector<16x128xf32>
    %12 = arith.maximumf %10, %11 : vector<16x128xf32>
    %cst_7 = arith.constant 1.000000e+00 : f32
    %13 = vector.broadcast %cst_7 : f32 to vector<16x128xf32>
    %14 = arith.subf %13, %3 : vector<16x128xf32>
    %15 = math.log %14 : vector<16x128xf32>
    %cst_8 = arith.constant -1.000000e+02 : f32
    %16 = vector.broadcast %cst_8 : f32 to vector<16x128xf32>
    %17 = arith.maximumf %15, %16 : vector<16x128xf32>
    %18 = arith.mulf %4, %12 : vector<16x128xf32>
    %cst_9 = arith.constant 1.000000e+00 : f32
    %19 = vector.broadcast %cst_9 : f32 to vector<16x128xf32>
    %20 = arith.subf %19, %4 : vector<16x128xf32>
    %21 = arith.mulf %20, %17 : vector<16x128xf32>
    %22 = arith.addf %18, %21 : vector<16x128xf32>
    %cst_10 = arith.constant 0.000000e+00 : f32
    %23 = vector.broadcast %cst_10 : f32 to vector<16x128xf32>
    %24 = arith.subf %23, %22 : vector<16x128xf32>
    %25 = arith.mulf %24, %9 : vector<16x128xf32>
    %c0_11 = arith.constant 0 : index
    %c0_12 = arith.constant 0 : index
    %26 = vector.load %arg5[%c0_11, %c0_12] : memref<16x128xf32, #tpu.memory_space<vmem>>, vector<16x128xf32>
    tpu.vector_store %arg5[%c0_11, %c0_12], %25 {strides = array<i32>} : memref<16x128xf32, #tpu.memory_space<vmem>>, vector<16x128xf32>,
    %c0_13 = arith.constant 0 : index
    %c0_14 = arith.constant 0 : index
    %27 = vector.load %arg6[%c0_13, %c0_14] : memref<8x128xf32, #tpu.memory_space<vmem>>, vector<8x128xf32>
    %28 = arith.mulf %24, %6 : vector<16x128xf32>
    %29 = vector.shape_cast %28 : vector<16x128xf32> to vector<2x8x128xf32>
    %cst_15 = arith.constant dense<0.000000e+00> : vector<8x128xf32>
    %30 = vector.multi_reduction <add>, %29, %cst_15 [0] : vector<2x8x128xf32> to vector<8x128xf32>
    %31 = arith.addf %27, %30 : vector<8x128xf32>
    %c0_16 = arith.constant 0 : index
    %c0_17 = arith.constant 0 : index
    %32 = vector.load %arg6[%c0_16, %c0_17] : memref<8x128xf32, #tpu.memory_space<vmem>>, vector<8x128xf32>
    tpu.vector_store %arg6[%c0_16, %c0_17], %31 {strides = array<i32>} : memref<8x128xf32, #tpu.memory_space<vmem>>, vector<8x128xf32>,
    %c0_18 = arith.constant 0 : index
    %c0_19 = arith.constant 0 : index
    %33 = vector.load %arg7[%c0_18, %c0_19] : memref<8x128xf32, #tpu.memory_space<vmem>>, vector<8x128xf32>
    %34 = vector.shape_cast %6 : vector<16x128xf32> to vector<2x8x128xf32>
    %cst_20 = arith.constant dense<0.000000e+00> : vector<8x128xf32>
    %35 = vector.multi_reduction <add>, %34, %cst_20 [0] : vector<2x8x128xf32> to vector<8x128xf32>
    %36 = arith.addf %33, %35 : vector<8x128xf32>
    %c0_21 = arith.constant 0 : index
    %c0_22 = arith.constant 0 : index
    %37 = vector.load %arg7[%c0_21, %c0_22] : memref<8x128xf32, #tpu.memory_space<vmem>>, vector<8x128xf32>
    tpu.vector_store %arg7[%c0_21, %c0_22], %36 {strides = array<i32>} : memref<8x128xf32, #tpu.memory_space<vmem>>, vector<8x128xf32>,
    %c0_23 = arith.constant 0 : index
    %c0_24 = arith.constant 0 : index
    %38 = vector.load %arg8[%c0_23, %c0_24] : memref<8x128xf32, #tpu.memory_space<vmem>>, vector<8x128xf32>
    %39 = vector.shape_cast %9 : vector<16x128xf32> to vector<2x8x128xf32>
    %cst_25 = arith.constant dense<0.000000e+00> : vector<8x128xf32>
    %40 = vector.multi_reduction <add>, %39, %cst_25 [0] : vector<2x8x128xf32> to vector<8x128xf32>
    %41 = arith.addf %38, %40 : vector<8x128xf32>
    %c0_26 = arith.constant 0 : index
    %c0_27 = arith.constant 0 : index
    %42 = vector.load %arg8[%c0_26, %c0_27] : memref<8x128xf32, #tpu.memory_space<vmem>>, vector<8x128xf32>
    tpu.vector_store %arg8[%c0_26, %c0_27], %41 {strides = array<i32>} : memref<8x128xf32, #tpu.memory_space<vmem>>, vector<8x128xf32>,
    return
  }
  func.func @transform_0(%arg0: i32, %arg1: i32) -> (i32, i32) {
    %c1_i32 = arith.constant 1 : i32
    %0 = arith.muli %arg0, %c1_i32 : i32
    %1 = arith.addi %0, %arg1 : i32
    %c0_i32 = arith.constant 0 : i32
    %c0_i32_0 = arith.constant 0 : i32
    return %1, %c0_i32 : i32, i32
  }
  func.func @transform_1(%arg0: i32, %arg1: i32) -> (i32, i32) {
    %c1_i32 = arith.constant 1 : i32
    %0 = arith.muli %arg0, %c1_i32 : i32
    %1 = arith.addi %0, %arg1 : i32
    %c0_i32 = arith.constant 0 : i32
    %c0_i32_0 = arith.constant 0 : i32
    return %1, %c0_i32 : i32, i32
  }
  func.func @transform_2(%arg0: i32, %arg1: i32) -> (i32, i32) {
    %c1_i32 = arith.constant 1 : i32
    %0 = arith.muli %arg0, %c1_i32 : i32
    %1 = arith.addi %0, %arg1 : i32
    %c0_i32 = arith.constant 0 : i32
    %c0_i32_0 = arith.constant 0 : i32
    return %1, %c0_i32 : i32, i32
  }
  func.func @transform_3(%arg0: i32, %arg1: i32) -> (i32, i32) {
    %c1_i32 = arith.constant 1 : i32
    %0 = arith.muli %arg0, %c1_i32 : i32
    %1 = arith.addi %0, %arg1 : i32
    %c0_i32 = arith.constant 0 : i32
    %c0_i32_0 = arith.constant 0 : i32
    return %1, %c0_i32 : i32, i32
  }
  func.func @transform_4(%arg0: i32, %arg1: i32) -> (i32, i32) {
    %c0_i32 = arith.constant 0 : i32
    %c0_i32_0 = arith.constant 0 : i32
    return %arg0, %c0_i32 : i32, i32
  }
  func.func @transform_5(%arg0: i32, %arg1: i32) -> (i32, i32) {
    %c0_i32 = arith.constant 0 : i32
    %c0_i32_0 = arith.constant 0 : i32
    return %arg0, %c0_i32 : i32, i32
  }
  func.func @transform_6(%arg0: i32, %arg1: i32) -> (i32, i32) {
    %c0_i32 = arith.constant 0 : i32
    %c0_i32_0 = arith.constant 0 : i32
    return %arg0, %c0_i32 : i32, i32
  }
}

</mosaic_0001>

<bundles_post_ra>
// kernel: balance_cross_entropy_loss.1
= control target key start
LH: loop header
LB: loop body
LE: loop exit
PB: predicated region body
PF: predicated region fallthrough
CT: control target
= control target key end

     0   :  { %s290_s0 = inlined_call_operand.vmem [shape: f32[16,128], index: 0, kind: input, shape index: {}]   ;;  %s291_s1 = inlined_call_operand.vmem [shape: f32[16,128], index: 1, kind: input, shape index: {}]   ;;  %s292_s2 = inlined_call_operand.vmem [shape: f32[16,128], index: 2, kind: input, shape index: {}]   ;;  %s293_s5 = inlined_call_operand.vmem [shape: f32[8,128], index: 5, kind: output, shape index: {2}]   ;;  %s294_s6 = inlined_call_operand.vmem [shape: f32[8,128], index: 6, kind: output, shape index: {3}]   ;;  %s295_s3 = inlined_call_operand.vmem [shape: f32[16,128], index: 3, kind: output, shape index: {0}]   ;;  %s296_s4 = inlined_call_operand.vmem [shape: f32[8,128], index: 4, kind: output, shape index: {1}]  }
   0x1   :  { %v105_v0 = vld [vmem:[%s290_s0] sm:$0xff]  ;;  %v106_v6 = vld [vmem:[%s290_s0 + $0x8] sm:$0xff] }
   0x2   :  { %v107_v1 = vld [vmem:[%s291_s1] sm:$0xff]  ;;  %214 = vlog2.f32 %v105_v0  ;;  %v123_v5 = vsub.f32 1.0, %v105_v0  ;;  %v108_v7 = vld [vmem:[%s291_s1 + $0x8] sm:$0xff]  ;;  %v124_v11 = vsub.f32 1.0, %v106_v6 }
   0x3   :  { %v109_v2 = vld [vmem:[%s292_s2] sm:$0xff]  ;;  %v113_v4 = vsub.f32 1.0, %v107_v1  ;;  %v110_v8 = vld [vmem:[%s292_s2 + $0x8] sm:$0xff]  ;;  %v114_v10 = vsub.f32 1.0, %v108_v7  ;;  %216 = vlog2.f32 %v106_v6 }
   0x4   :  { %v111_v3 = vmul.f32 %v109_v2, %v107_v1  ;;  %v112_v9 = vmul.f32 %v110_v8, %v108_v7  ;;  %218 = vlog2.f32 %v123_v5 }
   0x5   :  { %v115_v12 = vmul.f32 %v113_v4, %v109_v2  ;;  %v116_v13 = vmul.f32 %v114_v10, %v110_v8  ;;  %220 = vlog2.f32 %v124_v11 }
   0x6   :  { %v150_v14 = vadd.f32 %v112_v9, %v111_v3 }
   0x7   :  { %v154_v15 = vadd.f32 %v116_v13, %v115_v12 }
   0x8   :  { %v215_v16 = vpop.eup %214  ;;  %152 = vst [vmem:[%s293_s5] sm:$0xff] %v150_v14 }
   0x9   :  { %v217_v17 = vpop.eup %216  ;;  %v118_v18 = vmul.f32 0.6931472, %v215_v16  ;;  %156 = vst [vmem:[%s294_s6] sm:$0xff] %v154_v15 }
   0xa   :  { %v219_v19 = vpop.eup %218  ;;  %v120_v20 = vmul.f32 0.6931472, %v217_v17 }
   0xb   :  { %v221_v21 = vpop.eup %220  ;;  %v121_v22 = vmax.f32 %v118_v18, -100.0  ;;  %v126_v23 = vmul.f32 0.6931472, %v219_v19 }
   0xc   :  { %v122_v24 = vmax.f32 %v120_v20, -100.0  ;;  %v128_v25 = vmul.f32 0.6931472, %v221_v21 }
   0xd   :  { %v129_v26 = vmax.f32 %v126_v23, -100.0  ;;  %v131_v27 = vmul.f32 %v121_v22, %v107_v1 }
   0xe   :  { %v130_v28 = vmax.f32 %v128_v25, -100.0  ;;  %v132_v29 = vmul.f32 %v122_v24, %v108_v7 }
   0xf   :  { %v133_v30 = vmul.f32 %v129_v26, %v113_v4 }
  0x10   :  { %v134_v31 = vmul.f32 %v130_v28, %v114_v10 }
  0x11   :  { %v135_v32 = vadd.f32 %v133_v30, %v131_v27 }
  0x12   :  { %v136_v33 = vadd.f32 %v134_v31, %v132_v29 }
  0x13   :  { %v137_v34 = vsub.f32 0.0, %v135_v32 }
  0x14   :  { %v138_v35 = vsub.f32 0.0, %v136_v33 }
  0x15   :  { %v139_v36 = vmul.f32 %v137_v34, %v115_v12  ;;  %v144_v37 = vmul.f32 %v137_v34, %v111_v3 }
  0x16   :  { %v140_v38 = vmul.f32 %v138_v35, %v116_v13  ;;  %v145_v39 = vmul.f32 %v138_v35, %v112_v9 }
  0x17   :  { %141 = vst [vmem:[%s295_s3] sm:$0xff] %v139_v36 }
  0x18   :  { %142 = vst [vmem:[%s295_s3 + $0x8] sm:$0xff] %v140_v38  ;;  %v146_v40 = vadd.f32 %v145_v39, %v144_v37 }
  0x1a   :  { %148 = vst [vmem:[%s296_s4] sm:$0xff] %v146_v40 }

</bundles_post_ra>
